<compile_context>
chip_gen: v7x
topology: tpu7x:2x2x1
jax: 0.10.0
libtpu: 0.0.40
codegen_flags: <defaults>
</compile_context>

<pallas_src>
import numpy as np
import jax
import jax.numpy as jnp
from jax import lax
from jax.experimental import pallas as pl
from jax.experimental.pallas import tpu as pltpu

EPS = 1e-8
TEMPERATURE = 0.05       # NormSoftmaxLoss temperature
LAMBDA_SOFTMAX = 20.0    # RWALoss lambda_softmax (focal_type='prob')


# --------------------------------------------------------------------------
# sizing helpers
# --------------------------------------------------------------------------
def _vmem_limit_bytes():
    try:
        cap = int(pltpu.get_tpu_info().vmem_capacity_bytes)
    except Exception:
        cap = 64 * 1024 * 1024          # conservative default (v7x per-TC)
    return (cap * 3) // 4


def _choose_block_ctx(n_c, s_len, x_dim, vmem_limit):
    """Largest context block bc such that: bc | n_c, the output block's
    second-minor dim stays sublane aligned (bc % 8 == 0 or bc == n_c), ~4 live
    f32 (bc*s_len, x_dim) temporaries fit the VMEM budget, and the dominant
    matmul's M dim (bc*s_len) stays near a few MXU passes."""
    cands = [bc for bc in range(1, n_c + 1)
             if n_c % bc == 0 and (bc % 8 == 0 or bc == n_c)]
    budget = int(0.45 * vmem_limit)
    good = [bc for bc in cands
            if 4 * bc * s_len * x_dim * 4 <= budget and bc * s_len <= 512]
    return max(good) if good else min(cands)


# --------------------------------------------------------------------------
# kernel 1: query prep (l2norm + raw norms), run once per modality
# --------------------------------------------------------------------------
def _prep_query_kernel(q_ref, qn_ref, w1_ref):
    q = q_ref[...].astype(jnp.float32)                       # (x, D) word-major raw query
    nrm = jnp.sqrt(jnp.sum(q * q, axis=-1, keepdims=True))   # (x, 1) raw L2 norms
    qn_ref[...] = q / (nrm + EPS)
    w1_ref[...] = nrm.reshape(1, q.shape[0])                 # lane-dense (1, x)


def _prep_query(q_flat, vmem_limit):
    x, d = q_flat.shape
    vmem = pl.BlockSpec(memory_space=pltpu.MemorySpace.VMEM)
    # TODO(synk): grid this over row blocks if x*D ever outgrows VMEM.
    return pl.pallas_call(
        _prep_query_kernel,
        out_shape=(jax.ShapeDtypeStruct((x, d), jnp.float32),
                   jax.ShapeDtypeStruct((1, x), jnp.float32)),
        in_specs=[vmem],
        out_specs=(vmem, vmem),
        compiler_params=pltpu.CompilerParams(vmem_limit_bytes=vmem_limit),
    )(q_flat)


# --------------------------------------------------------------------------
# kernel 2: one cross-attention direction, gridded over context blocks
#   sim[c, q] = mean_l cos(raw_query[q, l], weightedContext_c[q, l])
# --------------------------------------------------------------------------
def _make_direction_kernel(q_len, n_q):
    x_dim = q_len * n_q

    def kernel(qn_ref, w1_ref, ctx_ref, cm_ref, out_ref):
        f32 = jnp.float32
        qn = qn_ref[...].astype(f32)       # (x, D)  L2-normalised word-major query (resident)
        w1 = w1_ref[...].astype(f32)       # (1, x)  raw query norms (resident)
        ctx = ctx_ref[...].astype(f32)     # (bc, s_len, D) context block
        cm = cm_ref[...].astype(f32)       # (bc, s_len)    additive context mask block
        bc, s_len, d = ctx.shape
        cs = bc * s_len

        # context l2norm — each context block is visited exactly once per direction
        c2 = ctx.reshape(cs, d)
        cn2 = c2 / (jnp.sqrt(jnp.sum(c2 * c2, axis=-1, keepdims=True)) + EPS)

        # (1) raw attention: single lane-dense A·Bᵀ MXU matmul
        g2 = lax.dot_general(cn2, qn, (((1,), (1,)), ((), ())),
                             preferred_element_type=f32)            # (cs, x)

        # (2) LeakyReLU + per-word l2norm in the word-major split layout
        #     (n_q in lanes, q_len in sublanes => sublane reduce)
        a3 = jnp.where(g2 > 0.0, g2, 0.1 * g2).reshape(cs, q_len, n_q)
        inv = 1.0 / (jnp.sqrt(jnp.sum(a3 * a3, axis=1, keepdims=True)) + EPS)
        an = (a3 * inv).reshape(bc, s_len, x_dim)

        # (3) context mask + lambda scale + stabilised exp.  The softmax
        #     denominator, the focal-'prob' renorm and the query mask are
        #     dropped: the first two cancel exactly in the cosine below and
        #     the query mask is constant along the source axis (no-op).
        z = LAMBDA_SOFTMAX * (an + cm[:, :, None])
        e = jnp.exp(z - jnp.max(z, axis=1, keepdims=True))          # unnormalised attn

        # (4) cosine(raw query, weightedContext) via the context Gram matrix
        #     (weightedContext itself is never materialised)
        g3 = g2.reshape(bc, s_len, x_dim)
        s_num = jnp.sum(e * g3, axis=1)                             # (bc, x)
        cn3 = cn2.reshape(bc, s_len, d)
        gram = lax.dot_general(cn3, cn3, (((2,), (2,)), ((0,), (0,))),
                               preferred_element_type=f32)          # (bc, s, s)
        g_attn = lax.dot_general(gram, e, (((2,), (1,)), ((0,), (0,))),
                                 preferred_element_type=f32)        # (bc, s, x)
        w2 = jnp.sqrt(jnp.maximum(jnp.sum(e * g_attn, axis=1), 0.0))  # (bc, x)

        cos = ((w1 + EPS) * s_num) / jnp.maximum(w1 * w2, EPS)      # (bc, x)
        out_ref[...] = jnp.mean(cos.reshape(bc, q_len, n_q),
                                axis=1).astype(out_ref.dtype)       # (bc, n_q)

    return kernel


def _xattn_direction(qn, w1, ctx, cmask, *, q_len, n_q, vmem_limit, block_ctx=None):
    n_c, s_len, d = ctx.shape
    x_dim = q_len * n_q
    assert qn.shape == (x_dim, d)
    bc = block_ctx if block_ctx is not None else _choose_block_ctx(
        n_c, s_len, x_dim, vmem_limit)
    assert n_c % bc == 0, "context block must divide the number of contexts"
    grid = (n_c // bc,)

    return pl.pallas_call(
        _make_direction_kernel(q_len, n_q),
        out_shape=jax.ShapeDtypeStruct((n_c, n_q), jnp.float32),
        grid_spec=pltpu.PrefetchScalarGridSpec(
            num_scalar_prefetch=0,
            grid=grid,
            in_specs=[
                pl.BlockSpec((x_dim, d), lambda i: (0, 0)),      # resident query
                pl.BlockSpec((1, x_dim), lambda i: (0, 0)),      # resident query norms
                pl.BlockSpec((bc, s_len, d), lambda i: (i, 0, 0)),  # streamed ctx block
                pl.BlockSpec((bc, s_len), lambda i: (i, 0)),     # streamed ctx mask
            ],
            out_specs=pl.BlockSpec((bc, n_q), lambda i: (i, 0)),
        ),
        compiler_params=pltpu.CompilerParams(
            dimension_semantics=("parallel",),
            vmem_limit_bytes=vmem_limit),
    )(qn, w1, ctx, cmask)


# --------------------------------------------------------------------------
# kernel 3: tiny epilogue — RWALoss + NormSoftmaxLoss on the (N, N) matrices
# --------------------------------------------------------------------------
def _loss_kernel(gsim_ref, i2t_ref, t2i_ref, loss_ref, gloss_ref, lloss_ref):
    f32 = jnp.float32
    i2t = i2t_ref[...].astype(f32)
    t2i = t2i_ref[...].astype(f32)
    sim = i2t + t2i.T
    n = sim.shape[0]
    row = lax.broadcasted_iota(jnp.int32, (n, n), 0)
    col = lax.broadcasted_iota(jnp.int32, (n, n), 1)
    labels = (row == col).astype(f32)

    # RWALoss (local): single log-softmax pass, pred = exp(lsm)
    logits = sim * LAMBDA_SOFTMAX
    z = logits - jnp.max(logits, axis=1, keepdims=True)
    lsm = z - jnp.log(jnp.sum(jnp.exp(z), axis=1, keepdims=True))
    pred = jnp.exp(lsm)
    lmat = pred * (lsm - jnp.log(labels + 1e-6))
    local_loss = jnp.sum(jnp.sum(lmat, axis=1, keepdims=True),
                         axis=0, keepdims=True) / n

    # NormSoftmaxLoss (global)
    xg = gsim_ref[...].astype(f32) / TEMPERATURE
    zi = xg - jnp.max(xg, axis=1, keepdims=True)
    i_lsm = zi - jnp.log(jnp.sum(jnp.exp(zi), axis=1, keepdims=True))
    zj = xg - jnp.max(xg, axis=0, keepdims=True)     # log_softmax(x.T) diag trick
    j_lsm = zj - jnp.log(jnp.sum(jnp.exp(zj), axis=0, keepdims=True))
    loss_i = jnp.sum(jnp.sum(i_lsm * labels, axis=1, keepdims=True),
                     axis=0, keepdims=True) / n
    loss_j = jnp.sum(jnp.sum(j_lsm * labels, axis=1, keepdims=True),
                     axis=0, keepdims=True) / n
    global_loss = -(loss_i + loss_j)

    loss_ref[...] = global_loss + local_loss
    gloss_ref[...] = global_loss
    lloss_ref[...] = local_loss


def _final_loss(global_sim, i2t, t2i, vmem_limit):
    vmem = pl.BlockSpec(memory_space=pltpu.MemorySpace.VMEM)
    return pl.pallas_call(
        _loss_kernel,
        out_shape=tuple(jax.ShapeDtypeStruct((1, 1), jnp.float32)
                        for _ in range(3)),
        in_specs=[vmem] * 3,
        out_specs=(vmem, vmem, vmem),
        compiler_params=pltpu.CompilerParams(vmem_limit_bytes=vmem_limit),
    )(global_sim, i2t, t2i)


# --------------------------------------------------------------------------
# public wrapper — mirrors GlobalLocalLoss(use_local=True, use_global=True)
# --------------------------------------------------------------------------
def global_local_loss(global_sim, local_im, local_s, local_im_m, local_s_l,
                      local_s_m, *, block_ctx=None):
    del local_s_l  # cap_lens are unused by the reference forward pass
    n_img, n_reg, d = local_im.shape
    n_cap, n_word, d2 = local_s.shape
    assert d == d2 and n_img == n_cap and global_sim.shape == (n_img, n_cap)
    vmem_limit = _vmem_limit_bytes()

    # word-major flattening for the "query" role (pure layout plumbing)
    cap_q = jnp.transpose(local_s, (1, 0, 2)).reshape(n_word * n_cap, d)
    im_q = jnp.transpose(local_im, (1, 0, 2)).reshape(n_reg * n_img, d)

    cap_qn, cap_w1 = _prep_query(cap_q, vmem_limit)
    im_qn, im_w1 = _prep_query(im_q, vmem_limit)

    # i2t: query = captions, context = images  -> (n_img, n_cap)
    i2t = _xattn_direction(cap_qn, cap_w1, local_im, local_im_m,
                           q_len=n_word, n_q=n_cap,
                           vmem_limit=vmem_limit, block_ctx=block_ctx)
    # t2i: query = images, context = captions  -> (n_cap, n_img)
    t2i = _xattn_direction(im_qn, im_w1, local_s, local_s_m,
                           q_len=n_reg, n_q=n_img,
                           vmem_limit=vmem_limit, block_ctx=block_ctx)

    loss, gloss, lloss = _final_loss(global_sim, i2t, t2i, vmem_limit)
    return loss[0, 0], gloss[0, 0], lloss[0, 0]


# --------------------------------------------------------------------------
# plain-JAX reference (transcription of the PyTorch forward) for verification
# --------------------------------------------------------------------------
def _reference(global_sim, im, s, im_m, s_m):
    hi = jax.lax.Precision.HIGHEST

    def l2n(x, axis):
        return x / (jnp.sqrt(jnp.sum(x * x, axis=axis, keepdims=True)) + EPS)

    def func_attn(query, context, q_mask, c_mask):
        q = l2n(query, -1)
        c = l2n(context, -1)
        attn = jnp.einsum('csd,qld->cqsl', c, q, precision=hi)
        attn = jnp.where(attn > 0, attn, 0.1 * attn)
        attn = l2n(attn, 3)
        attn = jnp.transpose(attn, (0, 1, 3, 2))
        attn = attn + q_mask[None, :, :, None] + c_mask[:, None, None, :]
        attn = jax.nn.softmax(attn * LAMBDA_SOFTMAX, axis=-1)
        attn = attn / jnp.sum(attn, axis=-1, keepdims=True)
        return jnp.einsum('cqls,csd->cqld', attn, c, precision=hi)

    def cos(x1, x2):
        w12 = jnp.sum(x1 * x2, -1)
        w1 = jnp.sqrt(jnp.sum(x1 * x1, -1))
        w2 = jnp.sqrt(jnp.sum(x2 * x2, -1))
        return w12 / jnp.maximum(w1 * w2, EPS)

    i2t = cos(s[None], func_attn(s, im, s_m, im_m)).mean(-1)
    t2i = cos(im[None], func_attn(im, s, im_m, s_m)).mean(-1)
    sim = t2i.T + i2t
    n = sim.shape[0]
    labels = jnp.eye(n)
    logits = sim * LAMBDA_SOFTMAX
    pred = jax.nn.softmax(logits, axis=1)
    lmat = pred * (jax.nn.log_softmax(logits, axis=1) - jnp.log(labels + 1e-6))
    local = jnp.mean(jnp.sum(lmat, axis=1))
    x = global_sim / TEMPERATURE
    gi = jnp.sum(jnp.diag(jax.nn.log_softmax(x, axis=1))) / n
    gj = jnp.sum(jnp.diag(jax.nn.log_softmax(x.T, axis=1))) / n
    g = -gi - gj
    return g + local, g, local


if __name__ == "__main__":
    key = jax.random.PRNGKey(0)
    k1, k2, k3, k4 = jax.random.split(key, 4)
    N, R, W, D = 16, 8, 8, 32

    local_im = jax.random.normal(k1, (N, R, D), jnp.float32)
    local_s = jax.random.normal(k2, (N, W, D), jnp.float32)
    # additive masks: 0/1 keeps, large negative masks padded positions
    local_im_m = jnp.zeros((N, R), jnp.float32).at[0, 6:].set(-1e4)
    local_s_m = jnp.ones((N, W), jnp.float32).at[1, 7].set(-1e4)
    local_s_l = jnp.full((N,), W, jnp.int32)   # unused by the forward pass

    # global_sim: cosine-similarity matrix of synthetic global embeddings
    g_im = jax.random.normal(k3, (N, D), jnp.float32)
    g_s = jax.random.normal(k4, (N, D), jnp.float32)
    g_im = g_im / jnp.linalg.norm(g_im, axis=-1, keepdims=True)
    g_s = g_s / jnp.linalg.norm(g_s, axis=-1, keepdims=True)
    global_sim = g_im @ g_s.T

    # block_ctx=8 -> a 2-step pipelined grid per direction at this demo size
    loss, gloss, lloss = jax.block_until_ready(
        global_local_loss(global_sim, local_im, local_s,
                          local_im_m, local_s_l, local_s_m, block_ctx=8))

    ref = _reference(global_sim, local_im, local_s, local_im_m, local_s_m)
    np.testing.assert_allclose(np.array([loss, gloss, lloss], dtype=np.float64),
                               np.array([float(r) for r in ref]),
                               rtol=5e-3, atol=5e-3)
    print("KERNEL_OK")
</pallas_src>

<mosaic_0001>
module attributes {stable_mosaic.version = 11 : i64} {
  func.func @_prep_query_kernel(%arg0: memref<128x32xf32, #tpu.memory_space<vmem>>, %arg1: memref<128x32xf32, #tpu.memory_space<vmem>>, %arg2: memref<1x128xf32, #tpu.memory_space<vmem>>) attributes {dimension_semantics = [], scalar_prefetch = 0 : i64, scratch_operands = 0 : i64, tpu.core_type = #tpu.core_type<tc>} {
    %c0 = arith.constant 0 : index
    %c0_0 = arith.constant 0 : index
    %0 = vector.load %arg0[%c0, %c0_0] : memref<128x32xf32, #tpu.memory_space<vmem>>, vector<128x32xf32>
    %1 = arith.mulf %0, %0 : vector<128x32xf32>
    %cst = arith.constant dense<0.000000e+00> : vector<128xf32>
    %2 = vector.multi_reduction <add>, %1, %cst [1] : vector<128x32xf32> to vector<128xf32>
    %3 = vector.shape_cast %2 : vector<128xf32> to vector<128x1xf32>
    %4 = math.sqrt %3 : vector<128x1xf32>
    %cst_1 = arith.constant 9.99999993E-9 : f32
    %5 = vector.broadcast %cst_1 : f32 to vector<128x1xf32>
    %6 = arith.addf %4, %5 : vector<128x1xf32>
    %7 = vector.broadcast %6 : vector<128x1xf32> to vector<128x32xf32>
    %8 = arith.divf %0, %7 : vector<128x32xf32>
    %c0_2 = arith.constant 0 : index
    %c0_3 = arith.constant 0 : index
    %9 = vector.load %arg1[%c0_2, %c0_3] : memref<128x32xf32, #tpu.memory_space<vmem>>, vector<128x32xf32>
    tpu.vector_store %arg1[%c0_2, %c0_3], %8 {strides = array<i32>} : memref<128x32xf32, #tpu.memory_space<vmem>>, vector<128x32xf32>,
    %10 = vector.shape_cast %4 : vector<128x1xf32> to vector<1x128xf32>
    %c0_4 = arith.constant 0 : index
    %c0_5 = arith.constant 0 : index
    %11 = vector.load %arg2[%c0_4, %c0_5] : memref<1x128xf32, #tpu.memory_space<vmem>>, vector<1x128xf32>
    tpu.vector_store %arg2[%c0_4, %c0_5], %10 {strides = array<i32>} : memref<1x128xf32, #tpu.memory_space<vmem>>, vector<1x128xf32>,
    return
  }
}

</mosaic_0001>

<bundles_post_ra>
// kernel: tpu_custom_call.1
= control target key start
LH: loop header
LB: loop body
LE: loop exit
PB: predicated region body
PF: predicated region fallthrough
CT: control target
= control target key end

     0   :  { %vm43_vm0 = vcmask 261120   ;;  %s1070_s0 = inlined_call_operand.vmem [shape: f32[128,32], index: 0, kind: input, shape index: {}]   ;;  %s1071_s1 = inlined_call_operand.vmem [shape: f32[128,32], index: 1, kind: output, shape index: {0}]   ;;  %s1072_s2 = inlined_call_operand.hbm [shape: f32[1,128], index: 2, kind: output, shape index: {1}]  }
   0x1   :  { %v523_v0 = vld [vmem:[%s1070_s0 + $0x10] sm:$0xff]  ;;  %v528_v1 = vld [vmem:[%s1070_s0] sm:$0xff]  ;;  %v533_v2 = vld [vmem:[%s1070_s0 + $0x18] sm:$0xff] }
   0x2   :  { %v29_v3 = vmul.f32 %v523_v0, %v523_v0  ;;  %v27_v4 = vmul.f32 %v528_v1, %v528_v1  ;;  %v30_v5 = vmul.f32 %v533_v2, %v533_v2  ;;  %v544_v6 = vld [vmem:[%s1070_s0 + $0x8] sm:$0xff]  ;;  %v556_v9 = vld [vmem:[%s1070_s0 + $0x20] sm:$0xff] }
   0x3   :  { %v28_v7 = vmul.f32 %v544_v6, %v544_v6  ;;  %v551_v8 = vld [vmem:[%s1070_s0 + $0x28] sm:$0xff]  ;;  %v31_v15 = vmul.f32 %v556_v9, %v556_v9 }
   0x4   :  { %v50_v10 = vsel %vm43_vm0, %v29_v3, 0.0  ;;  %v44_v11 = vsel %vm43_vm0, %v27_v4, 0.0  ;;  %v53_v12 = vsel %vm43_vm0, %v30_v5, 0.0  ;;  %v32_v14 = vmul.f32 %v551_v8, %v551_v8 }
   0x5   :  { %51 = vadd.xlane.f32.xlu1 %v50_v10  ;;  %45 = vadd.xlane.f32.xlu0 %v44_v11  ;;  %v47_v13 = vsel %vm43_vm0, %v28_v7, 0.0 }
   0x6   :  { %8 = vsyncpa [#allocation3], 0  ;;  %v569_v16 = vld [vmem:[%s1070_s0 + $0x38] sm:$0xff]  ;;  %v574_v17 = vld [vmem:[%s1070_s0 + $0x30] sm:$0xff]  ;;  %v59_v18 = vsel %vm43_vm0, %v32_v14, 0.0  ;;  %v56_v19 = vsel %vm43_vm0, %v31_v15, 0.0  ;;  %v284_v48 = vlaneseq }
   0x7   :  { %v34_v20 = vmul.f32 %v569_v16, %v569_v16  ;;  %v33_v21 = vmul.f32 %v574_v17, %v574_v17  ;;  %v585_v22 = vld [vmem:[%s1070_s0 + $0x48] sm:$0xff]  ;;  %v590_v23 = vld [vmem:[%s1070_s0 + $0x40] sm:$0xff]  ;;  %v601_v28 = vld [vmem:[%s1070_s0 + $0x58] sm:$0xff]  ;;  %vm295_vm9 = vcmask 130112   ;;  %vm302_vm12 = vcmask 195712   ;;  %s504_s4 = smov [#allocation2]  }
   0x8   :  { %v36_v26 = vmul.f32 %v585_v22, %v585_v22  ;;  %v35_v27 = vmul.f32 %v590_v23, %v590_v23  ;;  %v606_v29 = vld [vmem:[%s1070_s0 + $0x50] sm:$0xff]  ;;  %v38_v32 = vmul.f32 %v601_v28, %v601_v28  ;;  %v617_v34 = vld [vmem:[%s1070_s0 + $0x68] sm:$0xff]  ;;  %v622_v35 = vld [vmem:[%s1070_s0 + $0x60] sm:$0xff]  ;;  %v648_v49 = vand.u32 127, %v284_v48  ;;  %s405_s5 = sshll.u32 %s504_s4, 4  ;;  %s406_s5 = int_to_ptr.vmem [resolvable:$true] %s405_s5 }
   0x9   :  { %54 = vadd.xlane.f32.xlu1 %v53_v12  ;;  %48 = vadd.xlane.f32.xlu0 %v47_v13  ;;  %v65_v24 = vsel %vm43_vm0, %v34_v20, 0.0  ;;  %v62_v25 = vsel %vm43_vm0, %v33_v21, 0.0  ;;  %v37_v33 = vmul.f32 %v606_v29, %v606_v29  ;;  %v40_v38 = vmul.f32 %v617_v34, %v617_v34  ;;  %v633_v40 = vld [vmem:[%s1070_s0 + $0x78] sm:$0xff]  ;;  %v638_v41 = vld [vmem:[%s1070_s0 + $0x70] sm:$0xff]  ;;  %s480_s6 = scalar_lea.vmem %s406_s5, 16  ;;  %s484_s7 = scalar_lea.vmem %s406_s5, 32 }
   0xa   :  { %v71_v30 = vsel %vm43_vm0, %v36_v26, 0.0  ;;  %v68_v31 = vsel %vm43_vm0, %v35_v27, 0.0  ;;  %v77_v36 = vsel %vm43_vm0, %v38_v32, 0.0  ;;  %v39_v39 = vmul.f32 %v622_v35, %v622_v35  ;;  %p481_p0 = scmp.ne.s32.totalorder %s406_s5, %s480_s6  ;;  %p485_p1 = scmp.lt.s32.totalorder %s406_s5, %s406_s5 }
   0xb   :  { %v74_v37 = vsel %vm43_vm0, %v37_v33, 0.0  ;;  %v83_v42 = vsel %vm43_vm0, %v40_v38, 0.0  ;;  %v42_v44 = vmul.f32 %v633_v40, %v633_v40  ;;  %v41_v45 = vmul.f32 %v638_v41, %v638_v41  ;;  %p486_p2 = scmp.lt.s32.totalorder %s484_s7, %s480_s6 }
   0xc   :  { %v80_v43 = vsel %vm43_vm0, %v39_v39, 0.0  ;;  %v653_v52 = vshrl.u32 %v284_v48, 7  ;;  %v656_v53 = vadd.s32 4294967280, %v648_v49  ;;  %v659_v54 = vadd.s32 4294967272, %v648_v49 }
   0xd   :  { %60 = vadd.xlane.f32.xlu1 %v59_v18  ;;  %57 = vadd.xlane.f32.xlu0 %v56_v19  ;;  %v89_v46 = vsel %vm43_vm0, %v42_v44, 0.0  ;;  %v86_v47 = vsel %vm43_vm0, %v41_v45, 0.0  ;;  %v664_v56 = vadd.s32 4294967288, %v648_v49  ;;  %v669_v58 = vadd.s32 4294967256, %v648_v49  ;;  %p487_p3 = por %p486_p2, %p485_p1 }
   0xe   :  { %v672_v59 = vadd.s32 4294967264, %v648_v49  ;;  %v676_v60 = vadd.s32 4294967240, %v648_v49  ;;  %v679_v61 = vadd.s32 4294967248, %v648_v49  ;;  %v682_v62 = vadd.s32 4294967224, %v648_v49 }
   0xf   :  { %v686_v63 = vadd.s32 4294967232, %v648_v49  ;;  %v689_v3 = vadd.s32 4294967208, %v648_v49  ;;  %v692_v4 = vadd.s32 4294967216, %v648_v49  ;;  %v300_v5 = vsub.s32 %v656_v53, %v653_v52  ;;  %p488_p4 = pnand %p487_p3, %p481_p0 }
  0x10   :  { %v288_v7 = vsub.s32 %v648_v49, %v653_v52  ;;  %v307_v10 = vsub.s32 %v659_v54, %v653_v52  ;;  %v293_v11 = vsub.s32 %v664_v56, %v653_v52  ;;  %v321_v12 = vsub.s32 %v669_v58, %v653_v52 }
  0x11   :  { %66 = vadd.xlane.f32.xlu1 %v65_v24  ;;  %63 = vadd.xlane.f32.xlu0 %v62_v25  ;;  %v314_v14 = vsub.s32 %v672_v59, %v653_v52  ;;  %v335_v18 = vsub.s32 %v676_v60, %v653_v52  ;;  %v328_v19 = vsub.s32 %v679_v61, %v653_v52  ;;  %v725_v27 = vadd.s32 4294967200, %v648_v49 }
  0x12   :  { %v349_v20 = vsub.s32 %v682_v62, %v653_v52  ;;  %v342_v21 = vsub.s32 %v686_v63, %v653_v52  ;;  %vm309_vm15 = vcmask 261312  }
  0x15   :  { %72 = vadd.xlane.f32.xlu1 %v71_v30  ;;  %69 = vadd.xlane.f32.xlu0 %v68_v31  ;;  %v728_v30 = vadd.s32 4294967192, %v648_v49 }
  0x19   :  { %78 = vadd.xlane.f32.xlu1 %v77_v36  ;;  %75 = vadd.xlane.f32.xlu0 %v74_v37 }
  0x1d   :  { %84 = vadd.xlane.f32.xlu1 %v83_v42  ;;  %81 = vadd.xlane.f32.xlu0 %v80_v43 }
  0x21   :  { %90 = vadd.xlane.f32.xlu1 %v89_v46  ;;  %87 = vadd.xlane.f32.xlu0 %v86_v47 }
  0x92   :  { %v52_v50 = vpop.xlane.xlu1 %51  ;;  %v650_v51 = vpop.xlane.xlu0 %45 }
  0x93   :  { %416 = vrsqrt.f32 %v52_v50  ;;  %vm108_vm1 = vcmp.eq.f32.partialorder %v52_v50, inf  ;;  %vm110_vm2 = vcmp.eq.f32.partialorder %v52_v50, 0.0  ;;  %v111_v33 = vand.u32 2147483648, %v52_v50 }
  0x94   :  { %418 = vrsqrt.f32 %v650_v51  ;;  %vm94_vm3 = vcmp.eq.f32.partialorder %v650_v51, inf  ;;  %vm96_vm4 = vcmp.eq.f32.partialorder %v650_v51, 0.0  ;;  %v97_v39 = vand.u32 2147483648, %v650_v51 }
  0x96   :  { %v661_v55 = vpop.xlane.xlu1 %54  ;;  %v666_v57 = vpop.xlane.xlu0 %48 }
  0x97   :  { %420 = vrsqrt.f32 %v661_v55  ;;  %vm115_vm5 = vcmp.eq.f32.partialorder %v661_v55, inf  ;;  %vm117_vm6 = vcmp.eq.f32.partialorder %v661_v55, 0.0  ;;  %v118_v43 = vand.u32 2147483648, %v661_v55 }
  0x98   :  { %422 = vrsqrt.f32 %v666_v57  ;;  %vm101_vm7 = vcmp.eq.f32.partialorder %v666_v57, inf  ;;  %vm103_vm8 = vcmp.eq.f32.partialorder %v666_v57, 0.0 }
  0x9a   :  { %v704_v13 = vpop.xlane.xlu1 %60  ;;  %v708_v15 = vpop.xlane.xlu0 %57 }
  0x9b   :  { %424 = vrsqrt.f32 %v704_v13  ;;  %vm129_vm10 = vcmp.eq.f32.partialorder %v704_v13, inf  ;;  %vm131_vm11 = vcmp.eq.f32.partialorder %v704_v13, 0.0  ;;  %vm122_vm13 = vcmp.eq.f32.partialorder %v708_v15, inf }
  0x9c   :  { %426 = vrsqrt.f32 %v708_v15  ;;  %vm124_vm14 = vcmp.eq.f32.partialorder %v708_v15, 0.0 }
  0x9d   :  { %v417_v26 = vpop.eup %416 }
  0x9e   :  { %v419_v31 = vpop.eup %418  ;;  %v107_v32 = vmul.f32 %v417_v26, %v52_v50  ;;  %v732_v36 = vpop.xlane.xlu1 %66 }
  0x9f   :  { %v734_v37 = vpop.xlane.xlu0 %63  ;;  %v93_v38 = vmul.f32 %v419_v31, %v650_v51  ;;  %428 = vrsqrt.f32 %v732_v36 }
  0xa0   :  { %v109_v42 = vsel %vm108_vm1, %v52_v50, %v107_v32  ;;  %430 = vrsqrt.f32 %v734_v37  ;;  %v104_v32 = vand.u32 2147483648, %v666_v57  ;;  %vm143_vm1 = vcmp.eq.f32.partialorder %v732_v36, inf }
  0xa1   :  { %v421_v44 = vpop.eup %420  ;;  %v112_v45 = vsel %vm110_vm2, %v111_v33, %v109_v42  ;;  %v95_v46 = vsel %vm94_vm3, %v650_v51, %v93_v38  ;;  %v132_v38 = vand.u32 2147483648, %v704_v13  ;;  %vm145_vm2 = vcmp.eq.f32.partialorder %v732_v36, 0.0 }
  0xa2   :  { %v423_v47 = vpop.eup %422  ;;  %v206_v48 = vadd.f32 1e-08, %v112_v45  ;;  %v98_v26 = vsel %vm96_vm4, %v97_v39, %v95_v46  ;;  %v114_v31 = vmul.f32 %v421_v44, %v661_v55  ;;  %v751_v25 = vpop.xlane.xlu1 %72  ;;  %vm136_vm3 = vcmp.eq.f32.partialorder %v734_v37, inf }
  0xa3   :  { %v204_v50 = vadd.f32 1e-08, %v98_v26  ;;  %v100_v33 = vmul.f32 %v423_v47, %v666_v57  ;;  %432 = vrsqrt.f32 %v751_v25  ;;  %v761_v39 = vpop.xlane.xlu0 %69  ;;  %v289_v56 = vrot.slane %v98_v26, %v288_v7 }
  0xa4   :  { %434 = vrcp.f32 %v206_v48  ;;  %v116_v51 = vsel %vm115_vm5, %v661_v55, %v114_v31  ;;  %vm316_vm4 = vcmask 326912   ;;  %vm138_vm5 = vcmp.eq.f32.partialorder %v734_v37, 0.0 }
  0xa5   :  { %v425_v42 = vpop.eup %424  ;;  %436 = vrcp.f32 %v204_v50  ;;  %v765_v44 = vsel %vm117_vm6, %v118_v43, %v116_v51  ;;  %v102_v46 = vsel %vm101_vm7, %v666_v57, %v100_v33  ;;  %v125_v50 = vand.u32 2147483648, %v708_v15 }
  0xa6   :  { %v427_v47 = vpop.eup %426  ;;  %v207_v48 = vadd.f32 1e-08, %v765_v44  ;;  %v105_v31 = vsel %vm103_vm8, %v104_v32, %v102_v46  ;;  %v128_v24 = vmul.f32 %v425_v42, %v704_v13  ;;  %438 = vrsqrt.f32 %v761_v39 }
  0xa7   :  { %v205_v55 = vadd.f32 1e-08, %v105_v31  ;;  %v121_v43 = vmul.f32 %v427_v47, %v708_v15  ;;  %v294_v32 = vrot.slane %v105_v31, %v293_v11  ;;  %vm157_vm6 = vcmp.eq.f32.partialorder %v751_v25, inf }
  0xa8   :  { %440 = vrcp.f32 %v207_v48  ;;  %v130_v33 = vsel %vm129_vm10, %v704_v13, %v128_v24  ;;  %v794_v24 = vpop.xlane.xlu1 %78  ;;  %vm159_vm7 = vcmp.eq.f32.partialorder %v751_v25, 0.0  ;;  %vm323_vm8 = vcmask 392512  }
  0xa9   :  { %v429_v57 = vpop.eup %428  ;;  %442 = vrcp.f32 %v205_v55  ;;  %v789_v51 = vsel %vm131_vm11, %v132_v38, %v130_v33  ;;  %v123_v42 = vsel %vm122_vm13, %v708_v15, %v121_v43  ;;  %v146_v55 = vand.u32 2147483648, %v732_v36  ;;  %v806_v38 = vpop.xlane.xlu0 %75 }
  0xaa   :  { %v431_v46 = vpop.eup %430  ;;  %v209_v47 = vadd.f32 1e-08, %v789_v51  ;;  %v126_v48 = vsel %vm124_vm14, %v125_v50, %v123_v42  ;;  %v142_v13 = vmul.f32 %v429_v57, %v732_v36  ;;  %v301_v15 = vrot.slane %v112_v45, %v300_v5 }
  0xab   :  { %v208_v11 = vadd.f32 1e-08, %v126_v48  ;;  %v135_v31 = vmul.f32 %v431_v46, %v734_v37  ;;  %v139_v43 = vand.u32 2147483648, %v734_v37  ;;  %v296_v7 = vsel %vm295_vm9, %v294_v32, %v289_v56 }
  0xac   :  { %444 = vrcp.f32 %v209_v47  ;;  %v144_v26 = vsel %vm143_vm1, %v732_v36, %v142_v13  ;;  %v160_v36 = vand.u32 2147483648, %v751_v25  ;;  %v832_v47 = vpop.xlane.xlu1 %84  ;;  %v303_v56 = vsel %vm302_vm12, %v301_v15, %v296_v7 }
  0xad   :  { %v433_v50 = vpop.eup %432  ;;  %446 = vrcp.f32 %v208_v11  ;;  %v820_v53 = vsel %vm145_vm2, %v146_v55, %v144_v26  ;;  %v137_v5 = vsel %vm136_vm3, %v734_v37, %v135_v31  ;;  %vm330_vm9 = vcmask 458112   ;;  %v849_v15 = vpop.xlane.xlu0 %81 }
  0xae   :  { %v435_v33 = vpop.eup %434  ;;  %v156_v45 = vmul.f32 %v433_v50, %v751_v25  ;;  %v211_v42 = vadd.f32 1e-08, %v820_v53  ;;  %v140_v46 = vsel %vm138_vm5, %v139_v43, %v137_v5  ;;  %v308_v37 = vrot.slane %v765_v44, %v307_v10 }
  0xaf   :  { %v437_v57 = vpop.eup %436  ;;  %v225_v32 = vmul.f32 %v435_v33, %v523_v0  ;;  %v210_v11 = vadd.f32 1e-08, %v140_v46  ;;  %v370_v31 = vsub.s32 %v725_v27, %v653_v52  ;;  %v315_v54 = vrot.slane %v126_v48, %v314_v14 }
  0xb0   :  { %v221_v55 = vmul.f32 %v437_v57, %v528_v1  ;;  %v158_v0 = vsel %vm157_vm6, %v751_v25, %v156_v45  ;;  %v439_v13 = vpop.eup %438  ;;  %448 = vrcp.f32 %v211_v42  ;;  %v861_v25 = vadd.s32 4294967184, %v648_v49  ;;  %v877_v14 = vpop.xlane.xlu1 %90 }
  0xb1   :  { %254 = vst.msk [vmem:[%s1071_s1 + $0x10] sm:$0xff] %vm43_vm0, %v225_v32  ;;  %v161_v1 = vsel %vm159_vm7, %v160_v36, %v158_v0  ;;  %450 = vrcp.f32 %v210_v11  ;;  %v310_v7 = vsel %vm309_vm15, %v308_v37, %v303_v56  ;;  %v149_v26 = vmul.f32 %v439_v13, %v761_v39  ;;  %v897_v36 = vpop.xlane.xlu0 %87 }
  0xb2   :  { %v441_v43 = vpop.eup %440  ;;  %252 = vst.msk [vmem:[%s1071_s1] sm:$0xff] %vm43_vm0, %v221_v55  ;;  %v213_v10 = vadd.f32 1e-08, %v161_v1  ;;  %452 = vrsqrt.f32 %v794_v24  ;;  %vm337_vm10 = vcmask 523712   ;;  %vm150_vm11 = vcmp.eq.f32.partialorder %v761_v39, inf }
  0xb3   :  { %v443_v44 = vpop.eup %442  ;;  %v227_v50 = vmul.f32 %v441_v43, %v533_v2  ;;  %v153_v59 = vand.u32 2147483648, %v761_v39  ;;  %vm344_vm12 = vcmask 589312   ;;  %v151_v2 = vsel %vm150_vm11, %v761_v39, %v149_v26 }
  0xb4   :  { %v223_v33 = vmul.f32 %v443_v44, %v544_v6  ;;  %454 = vrcp.f32 %v213_v10  ;;  %vm152_vm13 = vcmp.eq.f32.partialorder %v761_v39, 0.0  ;;  %v880_v6 = vadd.s32 4294967176, %v648_v49 }
  0xb5   :  { %255 = vst.msk [vmem:[%s1071_s1 + $0x18] sm:$0xff] %vm43_vm0, %v227_v50  ;;  %456 = vrsqrt.f32 %v806_v38  ;;  %v322_v5 = vrot.slane %v789_v51, %v321_v12  ;;  %v317_v39 = vsel %vm316_vm4, %v315_v54, %v310_v7  ;;  %v154_v45 = vsel %vm152_vm13, %v153_v59, %v151_v2 }
  0xb6   :  { %v445_v48 = vpop.eup %444  ;;  %253 = vst.msk [vmem:[%s1071_s1 + $0x8] sm:$0xff] %vm43_vm0, %v223_v33  ;;  %458 = vrsqrt.f32 %v832_v47  ;;  %v329_v32 = vrot.slane %v140_v46, %v328_v19  ;;  %v212_v42 = vadd.f32 1e-08, %v154_v45  ;;  %vm351_vm14 = vcmask 654912  }
  0xb7   :  { %v447_v57 = vpop.eup %446  ;;  %v231_v49 = vmul.f32 %v445_v48, %v551_v8  ;;  %460 = vrsqrt.f32 %v849_v15  ;;  %v377_v12 = vsub.s32 %v728_v30, %v653_v52  ;;  %v384_v8 = vsub.s32 %v861_v25, %v653_v52 }
  0xb8   :  { %v229_v58 = vmul.f32 %v447_v57, %v556_v9  ;;  %462 = vrsqrt.f32 %v877_v14  ;;  %vm171_vm15 = vcmp.eq.f32.partialorder %v794_v24, inf  ;;  %vm173_vm1 = vcmp.eq.f32.partialorder %v794_v24, 0.0 }
  0xb9   :  { %257 = vst.msk [vmem:[%s1071_s1 + $0x28] sm:$0xff] %vm43_vm0, %v231_v49  ;;  %464 = vrcp.f32 %v212_v42  ;;  %v391_v9 = vsub.s32 %v880_v6, %v653_v52  ;;  %v336_v61 = vrot.slane %v820_v53, %v335_v18  ;;  %v324_v19 = vsel %vm323_vm8, %v322_v5, %v317_v39 }
  0xba   :  { %256 = vst.msk [vmem:[%s1071_s1 + $0x20] sm:$0xff] %vm43_vm0, %v229_v58  ;;  %v174_v51 = vand.u32 2147483648, %v794_v24  ;;  %466 = vrsqrt.f32 %v897_v36  ;;  %v449_v46 = vpop.eup %448  ;;  %v331_v55 = vsel %vm330_vm9, %v329_v32, %v324_v19  ;;  %v350_v56 = vrot.slane %v161_v1, %v349_v20 }
  0xbb   :  { %v343_v11 = vrot.slane %v154_v45, %v342_v21  ;;  %vm164_vm2 = vcmp.eq.f32.partialorder %v806_v38, inf  ;;  %v451_v60 = vpop.eup %450  ;;  %v235_v18 = vmul.f32 %v449_v46, %v569_v16  ;;  %vm166_vm3 = vcmp.eq.f32.partialorder %v806_v38, 0.0 }
  0xbc   :  { %v167_v53 = vand.u32 2147483648, %v806_v38  ;;  %vm185_vm4 = vcmp.eq.f32.partialorder %v832_v47, inf  ;;  %v453_v0 = vpop.eup %452  ;;  %v233_v62 = vmul.f32 %v451_v60, %v574_v17  ;;  %vm187_vm6 = vcmp.eq.f32.partialorder %v832_v47, 0.0 }
  0xbd   :  { %v188_v63 = vand.u32 2147483648, %v832_v47  ;;  %vm178_vm7 = vcmp.eq.f32.partialorder %v849_v15, inf  ;;  %259 = vst.msk [vmem:[%s1071_s1 + $0x38] sm:$0xff] %vm43_vm0, %v235_v18  ;;  %v170_v16 = vmul.f32 %v453_v0, %v794_v24  ;;  %vm180_vm9 = vcmp.eq.f32.partialorder %v849_v15, 0.0 }
  0xbe   :  { %v455_v20 = vpop.eup %454  ;;  %v181_v21 = vand.u32 2147483648, %v849_v15  ;;  %v338_v17 = vsel %vm337_vm10, %v336_v61, %v331_v55  ;;  %258 = vst.msk [vmem:[%s1071_s1 + $0x30] sm:$0xff] %vm43_vm0, %v233_v62  ;;  %vm199_vm11 = vcmp.eq.f32.partialorder %v877_v14, inf  ;;  %vm201_vm13 = vcmp.eq.f32.partialorder %v877_v14, 0.0 }
  0xbf   :  { %v457_v13 = vpop.eup %456  ;;  %v239_v37 = vmul.f32 %v455_v20, %v585_v22  ;;  %v345_v1 = vsel %vm344_vm12, %v343_v11, %v338_v17  ;;  %vm372_vm8 = vcmask 851712   ;;  %v172_v54 = vsel %vm171_vm15, %v794_v24, %v170_v16 }
  0xc0   :  { %v459_v43 = vpop.eup %458  ;;  %v163_v10 = vmul.f32 %v457_v13, %v806_v38  ;;  %v202_v44 = vand.u32 2147483648, %v877_v14  ;;  %vm192_vm10 = vcmp.eq.f32.partialorder %v897_v36, inf  ;;  %vm379_vm5 = vcmask 917312  }
  0xc1   :  { %v461_v22 = vpop.eup %460  ;;  %261 = vst.msk [vmem:[%s1071_s1 + $0x48] sm:$0xff] %vm43_vm0, %v239_v37  ;;  %v175_v50 = vsel %vm173_vm1, %v174_v51, %v172_v54  ;;  %v184_v7 = vmul.f32 %v459_v43, %v832_v47  ;;  %vm194_vm12 = vcmp.eq.f32.partialorder %v897_v36, 0.0  ;;  %v195_v26 = vand.u32 2147483648, %v897_v36 }
  0xc2   :  { %vm386_vm15 = vcmask 982912   ;;  %v463_v33 = vpop.eup %462  ;;  %v215_v59 = vadd.f32 1e-08, %v175_v50  ;;  %v165_v2 = vsel %vm164_vm2, %v806_v38, %v163_v10  ;;  %v177_v48 = vmul.f32 %v461_v22, %v849_v15 }
  0xc3   :  { %v352_v5 = vsel %vm351_vm14, %v350_v56, %v345_v1  ;;  %v465_v39 = vpop.eup %464  ;;  %v1073_v24 = vsub.s32 %v689_v3, %v653_v52  ;;  %v168_v57 = vsel %vm166_vm3, %v167_v53, %v165_v2  ;;  %v186_v49 = vsel %vm185_vm4, %v832_v47, %v184_v7 }
  0xc4   :  { %v198_v32 = vmul.f32 %v463_v33, %v877_v14  ;;  %v467_v42 = vpop.eup %466  ;;  %v237_v58 = vmul.f32 %v465_v39, %v590_v23  ;;  %468 = vrcp.f32 %v215_v59  ;;  %v214_v61 = vadd.f32 1e-08, %v168_v57 }
  0xc5   :  { %v364_v45 = vrot.slane %v175_v50, %v1073_v24  ;;  %v1074_v19 = vsub.s32 %v692_v4, %v653_v52  ;;  %v179_v3 = vsel %vm178_vm7, %v849_v15, %v177_v48  ;;  %v191_v46 = vmul.f32 %v467_v42, %v897_v36 }
  0xc6   :  { %v200_v38 = vsel %vm199_vm11, %v877_v14, %v198_v32  ;;  %v189_v55 = vsel %vm187_vm6, %v188_v63, %v186_v49  ;;  %260 = vst.msk [vmem:[%s1071_s1 + $0x40] sm:$0xff] %vm43_vm0, %v237_v58  ;;  %470 = vrcp.f32 %v214_v61  ;;  %v182_v23 = vsel %vm180_vm9, %v181_v21, %v179_v3 }
  0xc7   :  { %v357_v51 = vrot.slane %v168_v57, %v1074_v19  ;;  %v203_v4 = vsel %vm201_vm13, %v202_v44, %v200_v38  ;;  %v217_v56 = vadd.f32 1e-08, %v189_v55  ;;  %v216_v11 = vadd.f32 1e-08, %v182_v23 }
  0xc8   :  { %v193_v60 = vsel %vm192_vm10, %v897_v36, %v191_v46  ;;  %v219_v47 = vadd.f32 1e-08, %v203_v4  ;;  %vm1075_vm14 = vcmask 720512   ;;  %vm1076_vm1 = vcmask 786112  }
  0xc9   :  { %v359_v18 = vsel %vm1075_vm14, %v357_v51, %v352_v5  ;;  %v196_v53 = vsel %vm194_vm12, %v195_v26, %v193_v60  ;;  %472 = vrcp.f32 %v217_v56  ;;  %v371_v15 = vrot.slane %v182_v23, %v370_v31 }
  0xca   :  { %v366_v0 = vsel %vm1076_vm1, %v364_v45, %v359_v18  ;;  %474 = vrcp.f32 %v216_v11  ;;  %v218_v14 = vadd.f32 1e-08, %v196_v53  ;;  %v378_v62 = vrot.slane %v189_v55, %v377_v12 }
  0xcb   :  { %v385_v63 = vrot.slane %v196_v53, %v384_v8  ;;  %476 = vrcp.f32 %v219_v47  ;;  %v373_v36 = vsel %vm372_vm8, %v371_v15, %v366_v0  ;;  %v392_v27 = vrot.slane %v203_v4, %v391_v9 }
  0xcc   :  { %vm393_vm2 = vcmask 1048512   ;;  %478 = vrcp.f32 %v218_v14  ;;  %v380_v31 = vsel %vm379_vm5, %v378_v62, %v373_v36 }
  0xcd   :  { %v387_v30 = vsel %vm386_vm15, %v385_v63, %v380_v31 }
  0xce   :  { %v394_v12 = vsel %vm393_vm2, %v392_v27, %v387_v30  ;;  %v469_v20 = vpop.eup %468 }
  0xcf   :  { %396 = vst [vmem:[#allocation2] sm:$0x1] %v394_v12  ;;  %v243_v25 = vmul.f32 %v469_v20, %v601_v28 }
  0xd0   :  { %491 = shalt.err (!%p488_p4)
}
  0xd1   :  { %s492_s10 = scalar_lea.hbm %s1072_s2, 16 }
  0xd2   :  { %p493_p5 = scmp.ne.s32.totalorder %s1072_s2, %s492_s10  ;;  %p496_p6 = scmp.lt.u32.totalorder %s492_s10, %s1072_s2 }
  0xd4   :  { %p498_p7 = pnand %p496_p6, %p493_p5 }
  0xd6   :  { %501 = shalt.err (!%p498_p7)
}
  0xd7   :  { %408 = dma.vmem_to_hbm [thread:$0]  %s406_s5, 16, %s1072_s2, [#allocation3]   ;;  %v471_v28 = vpop.eup %470  ;;  %263 = vst.msk [vmem:[%s1071_s1 + $0x58] sm:$0xff] %vm43_vm0, %v243_v25 }
  0xd8   :  { %v241_v52 = vmul.f32 %v471_v28, %v606_v29  ;;  %v473_v6 = vpop.eup %472 }
  0xd9   :  { %v475_v8 = vpop.eup %474  ;;  %v247_v9 = vmul.f32 %v473_v6, %v617_v34 }
  0xda   :  { %262 = vst.msk [vmem:[%s1071_s1 + $0x50] sm:$0xff] %vm43_vm0, %v241_v52  ;;  %v477_v16 = vpop.eup %476  ;;  %v245_v21 = vmul.f32 %v475_v8, %v622_v35 }
  0xdb   :  { %v479_v17 = vpop.eup %478  ;;  %v251_v13 = vmul.f32 %v477_v16, %v633_v40  ;;  %265 = vst.msk [vmem:[%s1071_s1 + $0x68] sm:$0xff] %vm43_vm0, %v247_v9 }
  0xdc   :  { %264 = vst.msk [vmem:[%s1071_s1 + $0x60] sm:$0xff] %vm43_vm0, %v245_v21  ;;  %v249_v29 = vmul.f32 %v479_v17, %v638_v41 }
  0xdd   :  { %267 = vst.msk [vmem:[%s1071_s1 + $0x78] sm:$0xff] %vm43_vm0, %v251_v13 }
  0xde   :  { %266 = vst.msk [vmem:[%s1071_s1 + $0x70] sm:$0xff] %vm43_vm0, %v249_v29 }
  0xdf   :  { %502 = dma.done.wait [#allocation3], 16  }
  0xe0   :  { %503 = vsyncadd [#allocation3], 4294967280 }
  0xe1   :  { %414 = vsyncpa [#allocation3], 1 }

</bundles_post_ra>
